<compile_context>
chip_gen: v7x
topology: tpu7x:2x2x1
jax: 0.10.0
libtpu: 0.0.40
codegen_flags: <defaults>
</compile_context>

<pallas_src>
import functools

import jax
import jax.numpy as jnp
from jax import lax
from jax.experimental import pallas as pl
from jax.experimental.pallas import tpu as pltpu

LANES = 128
SUBLANES = 8
TARGET_BLOCK_ROWS = 8192   # (8192,128) f32 = 4 MiB per input tile
STRIP_ROWS = 512           # strip-wise accumulation keeps temporaries bounded
NUM_CHUNKS = 2             # leading "parallel" grid axis (2 TCs on v7x)
# TODO(synk): on v7x verify via xprof that the "parallel" chunk axis really
# shards across both TensorCores; if not, switch to pltpu.CORE_PARALLEL.
PAD_LOGIT = -30.0          # neutral logit, used only for the rare lane pad


def _round_up(x, m):
    return ((x + m - 1) // m) * m


def _cdiv(a, b):
    return -(-a // b)


def _sublane_align(dtype):
    # Min second-to-last block dim per dtype packing: f32 -> 8, bf16 -> 16,
    # int8/bool -> 32.
    return SUBLANES * max(1, 4 // jnp.dtype(dtype).itemsize)


def _combined_loss_partial_kernel(preds_ref, targets_ref, out_ref, *,
                                  blocks_per_chunk, nb_total, block_rows,
                                  strip_rows, valid_rows_last, pos_weight,
                                  focal_alpha, focal_gamma, binary_targets):
    c = pl.program_id(0)
    i = pl.program_id(1)
    b = c * blocks_per_chunk + i          # linear block id

    @pl.when(i == 0)
    def _():
        out_ref[...] = jnp.zeros_like(out_ref)

    n_strips = block_rows // strip_rows
    ragged = valid_rows_last < block_rows          # static
    n_full_blocks = nb_total - 1 if ragged else nb_total

    def strip_terms(p, t):
        """Per-element loss terms for one (strip_rows, LANES) strip."""
        # Stable sigmoid / BCE-with-logits from one exp + one log per element.
        neg_abs = -jnp.abs(p)
        e = jnp.exp(neg_abs)                     # EUP
        d = 1.0 + e
        sp = jnp.log(d)                          # EUP: log(1 + exp(-|p|))
        r0 = pl.reciprocal(d, approx=True)       # cheap EUP path
        r = r0 * (2.0 - d * r0)                  # one Newton step -> full f32
        probas = jnp.where(p >= 0, r, e * r)     # = sigmoid(p)

        inter = probas * t

        # NOTE: epsilon-free BCE-with-logits (differs from the reference's
        # log(probas + 1e-8) only for |logit| > ~18).
        if pos_weight == 1.0:
            bce = sp + jnp.maximum(p, 0.0) - t * p
        else:
            neg_log_p = sp - jnp.minimum(p, 0.0)      # -log(sigmoid(p))
            neg_log_1mp = sp + jnp.maximum(p, 0.0)    # -log(1 - sigmoid(p))
            bce = pos_weight * t * neg_log_p + (1.0 - t) * neg_log_1mp

        if binary_targets and pos_weight == 1.0:
            # exp(-bce) == t*probas + (1-t)*(1-probas) exactly for binary
            # targets; soft/label-smoothed targets must set
            # binary_targets=False.
            one_minus_pt = t + probas - 2.0 * inter
        else:
            one_minus_pt = 1.0 - jnp.exp(-bce)

        if focal_gamma == 2.0:
            mod = one_minus_pt * one_minus_pt        # avoid pow -> exp(log)
        else:
            # Deliberate divergence: clamp guards pow(negative, non-integer).
            mod = jnp.power(jnp.maximum(one_minus_pt, 0.0), focal_gamma)
        focal = focal_alpha * mod * bce
        return inter, probas, t, focal

    def fold(x):
        # (strip_rows, 128) -> (8, 128): sublane-aligned VPU adds only.
        return jnp.sum(x.reshape(strip_rows // SUBLANES, SUBLANES, LANES),
                       axis=0)

    def accumulate(masked):
        def strip_body(s, carry):
            a_i, a_p, a_t, a_f = carry
            start = s * strip_rows
            if not isinstance(start, int):
                start = pl.multiple_of(start, strip_rows)
            p = preds_ref[pl.ds(start, strip_rows), :].astype(jnp.float32)
            t = targets_ref[pl.ds(start, strip_rows), :].astype(jnp.float32)
            inter, probas, tt, focal = strip_terms(p, t)
            if masked:
                row = (lax.broadcasted_iota(jnp.int32, (strip_rows, LANES), 0)
                       + s * strip_rows)
                m = row < valid_rows_last
                zero = jnp.float32(0.0)
                inter = jnp.where(m, inter, zero)
                probas = jnp.where(m, probas, zero)
                tt = jnp.where(m, tt, zero)
                focal = jnp.where(m, focal, zero)
            return (a_i + fold(inter), a_p + fold(probas),
                    a_t + fold(tt), a_f + fold(focal))

        zeros = jnp.zeros((SUBLANES, LANES), jnp.float32)
        init = (zeros, zeros, zeros, zeros)
        if n_strips == 1:
            acc = strip_body(0, init)
        else:
            acc = lax.fori_loop(0, n_strips, strip_body, init)
        out_ref[0, 0] += acc[0]
        out_ref[0, 1] += acc[1]
        out_ref[0, 2] += acc[2]
        out_ref[0, 3] += acc[3]

    # Fully valid blocks: unmasked fast path.
    @pl.when(b < n_full_blocks)
    def _():
        accumulate(masked=False)

    # Ragged final block: mask rows >= valid_rows_last (static count).
    if ragged:
        @pl.when(b == nb_total - 1)
        def _():
            accumulate(masked=True)
    # Blocks with b >= nb_total (grid rounding, at most chunks-1 of them)
    # contribute nothing; their DMA is clamped via the index_map.


def combined_loss(preds, targets, *, pos_weight=1.0, alpha_dice=0.5,
                  alpha_focal=0.5, focal_alpha=0.25, focal_gamma=2.0,
                  smooth=1e-6, binary_targets=True):
    # Native dtypes pass straight through; the kernel upcasts per strip.
    p_flat = jnp.ravel(preds)
    t_flat = jnp.ravel(targets)
    if t_flat.dtype == jnp.bool_:
        t_flat = t_flat.astype(jnp.int8)
    n = p_flat.shape[0]

    rem = n % LANES
    if rem:
        # TODO(synk): fold this <128-element lane tail into the in-kernel mask
        # (needs a 1-D BlockSpec) instead of a full-array pad copy.
        lane_pad = LANES - rem
        p_flat = jnp.pad(p_flat, (0, lane_pad),
                         constant_values=jnp.asarray(PAD_LOGIT, p_flat.dtype))
        t_flat = jnp.pad(t_flat, (0, lane_pad),
                         constant_values=jnp.asarray(0, t_flat.dtype))
    rows = p_flat.shape[0] // LANES

    align = max(_sublane_align(p_flat.dtype), _sublane_align(t_flat.dtype))
    if rows > STRIP_ROWS:
        block_rows = min(TARGET_BLOCK_ROWS, _round_up(rows, STRIP_ROWS))
        strip_rows = STRIP_ROWS
    else:
        block_rows = _round_up(rows, align)
        strip_rows = block_rows

    nb_total = _cdiv(rows, block_rows)
    chunks = min(NUM_CHUNKS, nb_total)
    blocks_per_chunk = _cdiv(nb_total, chunks)
    valid_rows_last = rows - (nb_total - 1) * block_rows

    p2 = p_flat.reshape(rows, LANES)
    t2 = t_flat.reshape(rows, LANES)

    def in_index_map(c, i):
        b = c * blocks_per_chunk + i
        # Clamp grid-rounding overflow blocks onto the last valid block
        # (their contribution is skipped inside the kernel).
        return (jnp.minimum(b, nb_total - 1), 0)

    kernel = functools.partial(
        _combined_loss_partial_kernel,
        blocks_per_chunk=blocks_per_chunk, nb_total=nb_total,
        block_rows=block_rows, strip_rows=strip_rows,
        valid_rows_last=valid_rows_last,
        pos_weight=float(pos_weight), focal_alpha=float(focal_alpha),
        focal_gamma=float(focal_gamma), binary_targets=bool(binary_targets))

    total = rows * LANES
    cost = pl.CostEstimate(
        flops=24 * total,
        transcendentals=3 * total,
        bytes_accessed=int(p2.size * p2.dtype.itemsize
                           + t2.size * t2.dtype.itemsize
                           + chunks * 4 * SUBLANES * LANES * 4))

    partials = pl.pallas_call(
        kernel,
        out_shape=jax.ShapeDtypeStruct((chunks, 4, SUBLANES, LANES),
                                       jnp.float32),
        grid_spec=pltpu.PrefetchScalarGridSpec(
            num_scalar_prefetch=0,
            grid=(chunks, blocks_per_chunk),
            in_specs=[
                pl.BlockSpec((block_rows, LANES), in_index_map),
                pl.BlockSpec((block_rows, LANES), in_index_map),
            ],
            out_specs=pl.BlockSpec((1, 4, SUBLANES, LANES),
                                   lambda c, i: (c, 0, 0, 0)),
        ),
        compiler_params=pltpu.CompilerParams(
            dimension_semantics=("parallel", "arbitrary"),
            vmem_limit_bytes=40 * 1024 * 1024),
        cost_estimate=cost,
    )(p2, t2)

    # Tiny epilogue in plain JAX: one cross-lane reduce + ~10 scalar flops.
    sums = jnp.sum(partials, axis=(0, 2, 3))   # [inter, probas, targets, focal]
    intersection, p_sum, t_sum, f_sum = sums[0], sums[1], sums[2], sums[3]

    dice = (2.0 * intersection + smooth) / (p_sum + t_sum + smooth)
    loss_dice = 1.0 - dice
    loss_focal = f_sum / jnp.float32(n)
    return alpha_dice * loss_dice + alpha_focal * loss_focal


def _reference_combined_loss(preds, targets, *, pos_weight=1.0, alpha_dice=0.5,
                             alpha_focal=0.5, focal_alpha=0.25,
                             focal_gamma=2.0, smooth=1e-6):
    p = jnp.ravel(preds).astype(jnp.float32)
    t = jnp.ravel(targets).astype(jnp.float32)
    probas = jax.nn.sigmoid(p)
    inter = jnp.sum(probas * t)
    dice = (2.0 * inter + smooth) / (jnp.sum(probas) + jnp.sum(t) + smooth)
    loss_dice = 1.0 - dice
    bce = (-pos_weight * t * jnp.log(probas + 1e-8)
           - (1.0 - t) * jnp.log(1.0 - probas + 1e-8))
    pt = jnp.exp(-bce)
    focal = focal_alpha * (1.0 - pt) ** focal_gamma * bce
    loss_focal = jnp.mean(focal)
    return alpha_dice * loss_dice + alpha_focal * loss_focal


if __name__ == "__main__":
    key = jax.random.PRNGKey(0)
    k1, k2 = jax.random.split(key)
    # NCHW logits and binary targets, like a segmentation head output.
    preds = jax.random.normal(k1, (2, 4, 16, 16), dtype=jnp.float32)
    targets = (jax.random.uniform(k2, (2, 4, 16, 16)) > 0.5).astype(jnp.float32)

    loss = combined_loss(preds, targets)
    loss = jax.block_until_ready(loss)

    ref = _reference_combined_loss(preds, targets)
    assert jnp.allclose(loss, ref, atol=1e-5, rtol=1e-5), (loss, ref)
    print("KERNEL_OK")
</pallas_src>

<mosaic_0001>
module attributes {stable_mosaic.version = 11 : i64} {
  func.func @_combined_loss_partial_kernel(%arg0: i32, %arg1: i32, %arg2: memref<16x128xf32, #tpu.memory_space<vmem>>, %arg3: memref<16x128xf32, #tpu.memory_space<vmem>>, %arg4: memref<1x4x8x128xf32, #tpu.memory_space<vmem>>) attributes {dimension_semantics = [#tpu.dimension_semantics<parallel>, #tpu.dimension_semantics<arbitrary>], iteration_bounds = array<i64: 1, 1>, scalar_prefetch = 0 : i64, scratch_operands = 0 : i64, tpu.core_type = #tpu.core_type<tc>, window_params = [{transform_indices = @transform_0, window_bounds = array<i64: 16, 128>}, {transform_indices = @transform_1, window_bounds = array<i64: 16, 128>}, {transform_indices = @transform_2, window_bounds = array<i64: 1, 4, 8, 128>}]} {
    %c1_i32 = arith.constant 1 : i32
    %0 = arith.muli %arg0, %c1_i32 : i32
    %1 = arith.addi %0, %arg1 : i32
    %c0_i32 = arith.constant 0 : i32
    %2 = arith.cmpi eq, %arg1, %c0_i32 : i32
    %3 = arith.extui %2 : i1 to i32
    %c0_i32_0 = arith.constant 0 : i32
    %4 = arith.cmpi ne, %3, %c0_i32_0 : i32
    scf.if %4 {
      %cst = arith.constant 0.000000e+00 : f32
      %8 = vector.broadcast %cst : f32 to vector<1x4x8x128xf32>
      %c0 = arith.constant 0 : index
      %c0_3 = arith.constant 0 : index
      %c0_4 = arith.constant 0 : index
      %c0_5 = arith.constant 0 : index
      %9 = vector.load %arg4[%c0, %c0_3, %c0_4, %c0_5] : memref<1x4x8x128xf32, #tpu.memory_space<vmem>>, vector<1x4x8x128xf32>
      tpu.vector_store %arg4[%c0, %c0_3, %c0_4, %c0_5], %8 {strides = array<i32>} : memref<1x4x8x128xf32, #tpu.memory_space<vmem>>, vector<1x4x8x128xf32>,
    } else {
    }
    %c1_i32_1 = arith.constant 1 : i32
    %5 = arith.cmpi slt, %1, %c1_i32_1 : i32
    %6 = arith.extui %5 : i1 to i32
    %c0_i32_2 = arith.constant 0 : i32
    %7 = arith.cmpi ne, %6, %c0_i32_2 : i32
    scf.if %7 {
      %cst = arith.constant 0.000000e+00 : f32
      %8 = vector.broadcast %cst : f32 to vector<8x128xf32>
      %c0 = arith.constant 0 : index
      %c0_3 = arith.constant 0 : index
      %9 = vector.load %arg2[%c0, %c0_3] : memref<16x128xf32, #tpu.memory_space<vmem>>, vector<16x128xf32>
      %c0_4 = arith.constant 0 : index
      %c0_5 = arith.constant 0 : index
      %10 = vector.load %arg3[%c0_4, %c0_5] : memref<16x128xf32, #tpu.memory_space<vmem>>, vector<16x128xf32>
      %11 = math.absf %9 : vector<16x128xf32>
      %cst_6 = arith.constant 0.000000e+00 : f32
      %12 = vector.broadcast %cst_6 : f32 to vector<16x128xf32>
      %13 = arith.subf %12, %11 : vector<16x128xf32>
      %14 = math.exp %13 : vector<16x128xf32>
      %cst_7 = arith.constant 1.000000e+00 : f32
      %15 = vector.broadcast %cst_7 : f32 to vector<16x128xf32>
      %16 = arith.addf %15, %14 : vector<16x128xf32>
      %17 = math.log %16 : vector<16x128xf32>
      %18 = tpu.reciprocal %16 {approx = true} : vector<16x128xf32> -> vector<16x128xf32>
      %19 = arith.mulf %16, %18 : vector<16x128xf32>
      %cst_8 = arith.constant 2.000000e+00 : f32
      %20 = vector.broadcast %cst_8 : f32 to vector<16x128xf32>
      %21 = arith.subf %20, %19 : vector<16x128xf32>
      %22 = arith.mulf %18, %21 : vector<16x128xf32>
      %cst_9 = arith.constant 0.000000e+00 : f32
      %23 = vector.broadcast %cst_9 : f32 to vector<16x128xf32>
      %24 = arith.cmpf oge, %9, %23 : vector<16x128xf32>
      %25 = arith.mulf %14, %22 : vector<16x128xf32>
      %26 = arith.select %24, %22, %25 : vector<16x128xi1>, vector<16x128xf32>
      %27 = arith.mulf %26, %10 : vector<16x128xf32>
      %cst_10 = arith.constant 0.000000e+00 : f32
      %28 = vector.broadcast %cst_10 : f32 to vector<16x128xf32>
      %29 = arith.maximumf %9, %28 : vector<16x128xf32>
      %30 = arith.addf %17, %29 : vector<16x128xf32>
      %31 = arith.mulf %10, %9 : vector<16x128xf32>
      %32 = arith.subf %30, %31 : vector<16x128xf32>
      %33 = arith.addf %10, %26 : vector<16x128xf32>
      %cst_11 = arith.constant 2.000000e+00 : f32
      %34 = vector.broadcast %cst_11 : f32 to vector<16x128xf32>
      %35 = arith.mulf %34, %27 : vector<16x128xf32>
      %36 = arith.subf %33, %35 : vector<16x128xf32>
      %37 = arith.mulf %36, %36 : vector<16x128xf32>
      %cst_12 = arith.constant 2.500000e-01 : f32
      %38 = vector.broadcast %cst_12 : f32 to vector<16x128xf32>
      %39 = arith.mulf %38, %37 : vector<16x128xf32>
      %40 = arith.mulf %39, %32 : vector<16x128xf32>
      %41 = vector.shape_cast %27 : vector<16x128xf32> to vector<2x8x128xf32>
      %cst_13 = arith.constant dense<0.000000e+00> : vector<8x128xf32>
      %42 = vector.multi_reduction <add>, %41, %cst_13 [0] : vector<2x8x128xf32> to vector<8x128xf32>
      %43 = arith.addf %8, %42 : vector<8x128xf32>
      %44 = vector.shape_cast %26 : vector<16x128xf32> to vector<2x8x128xf32>
      %cst_14 = arith.constant dense<0.000000e+00> : vector<8x128xf32>
      %45 = vector.multi_reduction <add>, %44, %cst_14 [0] : vector<2x8x128xf32> to vector<8x128xf32>
      %46 = arith.addf %8, %45 : vector<8x128xf32>
      %47 = vector.shape_cast %10 : vector<16x128xf32> to vector<2x8x128xf32>
      %cst_15 = arith.constant dense<0.000000e+00> : vector<8x128xf32>
      %48 = vector.multi_reduction <add>, %47, %cst_15 [0] : vector<2x8x128xf32> to vector<8x128xf32>
      %49 = arith.addf %8, %48 : vector<8x128xf32>
      %50 = vector.shape_cast %40 : vector<16x128xf32> to vector<2x8x128xf32>
      %cst_16 = arith.constant dense<0.000000e+00> : vector<8x128xf32>
      %51 = vector.multi_reduction <add>, %50, %cst_16 [0] : vector<2x8x128xf32> to vector<8x128xf32>
      %52 = arith.addf %8, %51 : vector<8x128xf32>
      %c0_17 = arith.constant 0 : index
      %c0_18 = arith.constant 0 : index
      %c0_19 = arith.constant 0 : index
      %c0_20 = arith.constant 0 : index
      %53 = vector.load %arg4[%c0_17, %c0_18, %c0_19, %c0_20] : memref<1x4x8x128xf32, #tpu.memory_space<vmem>>, vector<1x1x8x128xf32>
      %54 = vector.shape_cast %53 : vector<1x1x8x128xf32> to vector<8x128xf32>
      %55 = arith.addf %54, %43 : vector<8x128xf32>
      %c0_21 = arith.constant 0 : index
      %c0_22 = arith.constant 0 : index
      %c0_23 = arith.constant 0 : index
      %c0_24 = arith.constant 0 : index
      %56 = vector.load %arg4[%c0_21, %c0_22, %c0_23, %c0_24] : memref<1x4x8x128xf32, #tpu.memory_space<vmem>>, vector<1x1x8x128xf32>
      %57 = vector.shape_cast %56 : vector<1x1x8x128xf32> to vector<8x128xf32>
      %58 = vector.shape_cast %55 : vector<8x128xf32> to vector<1x1x8x128xf32>
      tpu.vector_store %arg4[%c0_21, %c0_22, %c0_23, %c0_24], %58 {strides = array<i32>} : memref<1x4x8x128xf32, #tpu.memory_space<vmem>>, vector<1x1x8x128xf32>,
      %c0_25 = arith.constant 0 : index
      %c1 = arith.constant 1 : index
      %c0_26 = arith.constant 0 : index
      %c0_27 = arith.constant 0 : index
      %59 = vector.load %arg4[%c0_25, %c1, %c0_26, %c0_27] : memref<1x4x8x128xf32, #tpu.memory_space<vmem>>, vector<1x1x8x128xf32>
      %60 = vector.shape_cast %59 : vector<1x1x8x128xf32> to vector<8x128xf32>
      %61 = arith.addf %60, %46 : vector<8x128xf32>
      %c0_28 = arith.constant 0 : index
      %c1_29 = arith.constant 1 : index
      %c0_30 = arith.constant 0 : index
      %c0_31 = arith.constant 0 : index
      %62 = vector.load %arg4[%c0_28, %c1_29, %c0_30, %c0_31] : memref<1x4x8x128xf32, #tpu.memory_space<vmem>>, vector<1x1x8x128xf32>
      %63 = vector.shape_cast %62 : vector<1x1x8x128xf32> to vector<8x128xf32>
      %64 = vector.shape_cast %61 : vector<8x128xf32> to vector<1x1x8x128xf32>
      tpu.vector_store %arg4[%c0_28, %c1_29, %c0_30, %c0_31], %64 {strides = array<i32>} : memref<1x4x8x128xf32, #tpu.memory_space<vmem>>, vector<1x1x8x128xf32>,
      %c0_32 = arith.constant 0 : index
      %c2 = arith.constant 2 : index
      %c0_33 = arith.constant 0 : index
      %c0_34 = arith.constant 0 : index
      %65 = vector.load %arg4[%c0_32, %c2, %c0_33, %c0_34] : memref<1x4x8x128xf32, #tpu.memory_space<vmem>>, vector<1x1x8x128xf32>
      %66 = vector.shape_cast %65 : vector<1x1x8x128xf32> to vector<8x128xf32>
      %67 = arith.addf %66, %49 : vector<8x128xf32>
      %c0_35 = arith.constant 0 : index
      %c2_36 = arith.constant 2 : index
      %c0_37 = arith.constant 0 : index
      %c0_38 = arith.constant 0 : index
      %68 = vector.load %arg4[%c0_35, %c2_36, %c0_37, %c0_38] : memref<1x4x8x128xf32, #tpu.memory_space<vmem>>, vector<1x1x8x128xf32>
      %69 = vector.shape_cast %68 : vector<1x1x8x128xf32> to vector<8x128xf32>
      %70 = vector.shape_cast %67 : vector<8x128xf32> to vector<1x1x8x128xf32>
      tpu.vector_store %arg4[%c0_35, %c2_36, %c0_37, %c0_38], %70 {strides = array<i32>} : memref<1x4x8x128xf32, #tpu.memory_space<vmem>>, vector<1x1x8x128xf32>,
      %c0_39 = arith.constant 0 : index
      %c3 = arith.constant 3 : index
      %c0_40 = arith.constant 0 : index
      %c0_41 = arith.constant 0 : index
      %71 = vector.load %arg4[%c0_39, %c3, %c0_40, %c0_41] : memref<1x4x8x128xf32, #tpu.memory_space<vmem>>, vector<1x1x8x128xf32>
      %72 = vector.shape_cast %71 : vector<1x1x8x128xf32> to vector<8x128xf32>
      %73 = arith.addf %72, %52 : vector<8x128xf32>
      %c0_42 = arith.constant 0 : index
      %c3_43 = arith.constant 3 : index
      %c0_44 = arith.constant 0 : index
      %c0_45 = arith.constant 0 : index
      %74 = vector.load %arg4[%c0_42, %c3_43, %c0_44, %c0_45] : memref<1x4x8x128xf32, #tpu.memory_space<vmem>>, vector<1x1x8x128xf32>
      %75 = vector.shape_cast %74 : vector<1x1x8x128xf32> to vector<8x128xf32>
      %76 = vector.shape_cast %73 : vector<8x128xf32> to vector<1x1x8x128xf32>
      tpu.vector_store %arg4[%c0_42, %c3_43, %c0_44, %c0_45], %76 {strides = array<i32>} : memref<1x4x8x128xf32, #tpu.memory_space<vmem>>, vector<1x1x8x128xf32>,
    } else {
    }
    return
  }
  func.func @transform_0(%arg0: i32, %arg1: i32) -> (i32, i32) {
    %c1_i32 = arith.constant 1 : i32
    %0 = arith.muli %arg0, %c1_i32 : i32
    %1 = arith.addi %0, %arg1 : i32
    %c0_i32 = arith.constant 0 : i32
    %2 = arith.minsi %1, %c0_i32 : i32
    %c0_i32_0 = arith.constant 0 : i32
    %c0_i32_1 = arith.constant 0 : i32
    return %2, %c0_i32_0 : i32, i32
  }
  func.func @transform_1(%arg0: i32, %arg1: i32) -> (i32, i32) {
    %c1_i32 = arith.constant 1 : i32
    %0 = arith.muli %arg0, %c1_i32 : i32
    %1 = arith.addi %0, %arg1 : i32
    %c0_i32 = arith.constant 0 : i32
    %2 = arith.minsi %1, %c0_i32 : i32
    %c0_i32_0 = arith.constant 0 : i32
    %c0_i32_1 = arith.constant 0 : i32
    return %2, %c0_i32_0 : i32, i32
  }
  func.func @transform_2(%arg0: i32, %arg1: i32) -> (i32, i32, i32, i32) {
    %c0_i32 = arith.constant 0 : i32
    %c0_i32_0 = arith.constant 0 : i32
    %c0_i32_1 = arith.constant 0 : i32
    %c0_i32_2 = arith.constant 0 : i32
    return %arg0, %c0_i32, %c0_i32_0, %c0_i32_1 : i32, i32, i32, i32
  }
}

</mosaic_0001>

<bundles_post_ra>
// kernel: tpu_custom_call.1
= control target key start
LH: loop header
LB: loop body
LE: loop exit
PB: predicated region body
PF: predicated region fallthrough
CT: control target
= control target key end

     0   :  { %7 = vsyncpa [#allocation3], 0  ;;  %s327_s0 = inlined_call_operand.hbm [shape: f32[16,128], index: 0, kind: input, shape index: {}]   ;;  %s328_s1 = inlined_call_operand.hbm [shape: f32[16,128], index: 1, kind: input, shape index: {}]   ;;  %s329_s2 = inlined_call_operand.hbm [shape: f32[1,4,8,128], index: 2, kind: output, shape index: {}]  }
   0x1   :  { %8 = vsyncpa [#allocation6], 0 }
   0x2   :  { %9 = vsyncpa [#allocation4], 0  ;;  %s262_s9 = smov [#allocation2]   ;;  %s190_s13 = scalar_lea.hbm %s327_s0, 256 }
   0x3   :  { %s21_s10 = sshll.u32 %s262_s9, 4  ;;  %p191_p0 = scmp.ne.s32.totalorder %s327_s0, %s190_s13  ;;  %s22_s10 = int_to_ptr.vmem [resolvable:$true] %s21_s10 }
   0x4   :  { %p194_p1 = scmp.lt.u32.totalorder %s190_s13, %s327_s0 }
   0x6   :  { %p196_p2 = pnand %p194_p1, %p191_p0 }
   0x8   :  { %199 = shalt.err (!%p196_p2)
}
   0x9   :  { %s200_s18 = scalar_lea.vmem %s22_s10, 256  ;;  %p205_p4 = scmp.lt.s32.totalorder %s22_s10, %s22_s10 }
   0xa   :  { %p201_p3 = scmp.ne.s32.totalorder %s22_s10, %s200_s18  ;;  %p206_p5 = scmp.lt.s32.totalorder %s200_s18, %s200_s18 }
   0xc   :  { %p207_p6 = por %p206_p5, %p205_p4 }
   0xe   :  { %p208_p7 = pnand %p207_p6, %p201_p3 }
  0x10   :  { %211 = shalt.err (!%p208_p7)
}
  0x11   :  { %s263_s19 = smov 128   ;;  %s264_s20 = smov 8  }
  0x12   :  { %27 = dma.hbm_to_vmem [thread:$0]  %s327_s0, 256, %s22_s10, [#allocation3], %s263_s19, %s263_s19, %s264_s20  }
  0x13   :  { %s265_s23 = smov [#allocation5]   ;;  %s212_s27 = scalar_lea.hbm %s328_s1, 256 }
  0x14   :  { %s39_s24 = sshll.u32 %s265_s23, 4  ;;  %p213_p8 = scmp.ne.s32.totalorder %s328_s1, %s212_s27  ;;  %s40_s24 = int_to_ptr.vmem [resolvable:$true] %s39_s24 }
  0x15   :  { %p216_p9 = scmp.lt.u32.totalorder %s212_s27, %s328_s1 }
  0x17   :  { %p218_p10 = pnand %p216_p9, %p213_p8 }
  0x19   :  { %221 = shalt.err (!%p218_p10)
}
  0x1a   :  { %s222_s4 = scalar_lea.vmem %s40_s24, 256  ;;  %p227_p12 = scmp.lt.s32.totalorder %s40_s24, %s40_s24 }
  0x1b   :  { %p223_p11 = scmp.ne.s32.totalorder %s40_s24, %s222_s4  ;;  %p228_p13 = scmp.lt.s32.totalorder %s222_s4, %s222_s4 }
  0x1d   :  { %p229_p0 = por %p228_p13, %p227_p12 }
  0x1f   :  { %p230_p1 = pnand %p229_p0, %p223_p11 }
  0x21   :  { %233 = shalt.err (!%p230_p1)
}
  0x22   :  { %45 = dma.hbm_to_vmem [thread:$0]  %s328_s1, 256, %s40_s24, [#allocation6], %s263_s19, %s263_s19, %s264_s20  }
  0x23   :  { %256 = dma.done.wait [#allocation3], 256  }
  0x24   :  { %257 = vsyncadd [#allocation3], 4294967040 }
  0x25   :  { %258 = dma.done.wait [#allocation6], 256  }
  0x26   :  { %259 = vsyncadd [#allocation6], 4294967040  ;;  %v73_v0 = vld [vmem:[#allocation2] sm:$0xff]  ;;  %v74_v1 = vld [vmem:[#allocation2 + $0x8] sm:$0xff]  ;;  %s266_s1 = smov [#allocation7]  }
  0x27   :  { %v75_v2 = vld [vmem:[#allocation5] sm:$0xff]  ;;  %v76_v3 = vld [vmem:[#allocation5 + $0x8] sm:$0xff]  ;;  %v77_v4 = vand.u32 2147483647, %v73_v0  ;;  %v78_v5 = vand.u32 2147483647, %v74_v1 }
  0x28   :  { %v131_v6 = vadd.f32 %v76_v3, %v75_v2  ;;  %vm99_vm0 = vcmp.ge.f32.partialorder %v73_v0, 0.0  ;;  %vm100_vm1 = vcmp.ge.f32.partialorder %v74_v1, 0.0  ;;  %v107_v28 = vmax.f32 %v73_v0, 0.0  ;;  %s155_s6 = sshll.u32 %s266_s1, 4  ;;  %s156_s6 = int_to_ptr.vmem [resolvable:$true] %s155_s6 }
  0x29   :  { %v79_v7 = vsub.f32 0.0, %v77_v4  ;;  %v80_v8 = vsub.f32 0.0, %v78_v5  ;;  %v108_v31 = vmax.f32 %v74_v1, 0.0  ;;  %v111_v40 = vmul.f32 %v75_v2, %v73_v0  ;;  %s234_s7 = scalar_lea.vmem %s156_s6, 512  ;;  %p239_p3 = scmp.lt.s32.totalorder %s156_s6, %s156_s6 }
  0x2a   :  { %145 = vst [vmem:[#allocation7 + $0x10] sm:$0xff] %v131_v6  ;;  %v112_v41 = vmul.f32 %v76_v3, %v74_v1  ;;  %p235_p2 = scmp.ne.s32.totalorder %s156_s6, %s234_s7  ;;  %p240_p4 = scmp.lt.s32.totalorder %s234_s7, %s234_s7 }
  0x2b   :  { %v81_v9 = vmul.f32 1.442695, %v79_v7  ;;  %v83_v10 = vmul.f32 1.442695, %v80_v8 }
  0x2c   :  { %p241_p5 = por %p240_p4, %p239_p3 }
  0x2d   :  { %178 = vpow2.f32 %v81_v9 }
  0x2e   :  { %180 = vpow2.f32 %v83_v10  ;;  %p242_p6 = pnand %p241_p5, %p235_p2 }
  0x37   :  { %v179_v11 = vpop.eup %178 }
  0x38   :  { %v181_v12 = vpop.eup %180  ;;  %v85_v13 = vadd.f32 1.0, %v179_v11 }
  0x39   :  { %v86_v14 = vadd.f32 1.0, %v181_v12 }
  0x3a   :  { %182 = vrcp.f32 %v85_v13 }
  0x3b   :  { %184 = vrcp.f32 %v86_v14 }
  0x3c   :  { %186 = vlog2.f32 %v85_v13 }
  0x3d   :  { %188 = vlog2.f32 %v86_v14 }
  0x44   :  { %v183_v15 = vpop.eup %182 }
  0x45   :  { %v185_v16 = vpop.eup %184  ;;  %v93_v17 = vmul.f32 %v183_v15, %v85_v13 }
  0x46   :  { %v94_v18 = vmul.f32 %v185_v16, %v86_v14  ;;  %v187_v21 = vpop.eup %186 }
  0x47   :  { %v95_v19 = vsub.f32 2.0, %v93_v17  ;;  %v189_v23 = vpop.eup %188  ;;  %v88_v27 = vmul.f32 0.6931472, %v187_v21 }
  0x48   :  { %v96_v20 = vsub.f32 2.0, %v94_v18  ;;  %v90_v30 = vmul.f32 0.6931472, %v189_v23 }
  0x49   :  { %v97_v22 = vmul.f32 %v183_v15, %v95_v19  ;;  %v109_v39 = vadd.f32 %v107_v28, %v88_v27 }
  0x4a   :  { %v98_v24 = vmul.f32 %v185_v16, %v96_v20  ;;  %v110_v44 = vadd.f32 %v108_v31, %v90_v30 }
  0x4b   :  { %v101_v25 = vmul.f32 %v179_v11, %v97_v22  ;;  %v113_v47 = vsub.f32 %v109_v39, %v111_v40 }
  0x4c   :  { %v102_v26 = vmul.f32 %v181_v12, %v98_v24  ;;  %v114_v49 = vsub.f32 %v110_v44, %v112_v41 }
  0x4d   :  { %v103_v29 = vsel %vm99_vm0, %v97_v22, %v101_v25 }
  0x4e   :  { %v104_v32 = vsel %vm100_vm1, %v98_v24, %v102_v26  ;;  %v105_v33 = vmul.f32 %v103_v29, %v75_v2  ;;  %v115_v34 = vadd.f32 %v103_v29, %v75_v2 }
  0x4f   :  { %v106_v35 = vmul.f32 %v104_v32, %v76_v3  ;;  %v116_v36 = vadd.f32 %v104_v32, %v76_v3  ;;  %v129_v37 = vadd.f32 %v104_v32, %v103_v29 }
  0x50   :  { %v117_v38 = vmul.f32 2.0, %v105_v33 }
  0x51   :  { %v118_v42 = vmul.f32 2.0, %v106_v35  ;;  %v127_v43 = vadd.f32 %v106_v35, %v105_v33  ;;  %141 = vst [vmem:[#allocation7 + $0x8] sm:$0xff] %v129_v37 }
  0x52   :  { %v119_v45 = vsub.f32 %v115_v34, %v117_v38 }
  0x53   :  { %v120_v46 = vsub.f32 %v116_v36, %v118_v42  ;;  %137 = vst [vmem:[#allocation7] sm:$0xff] %v127_v43 }
  0x54   :  { %v121_v48 = vmul.f32 %v119_v45, %v119_v45 }
  0x55   :  { %v122_v50 = vmul.f32 %v120_v46, %v120_v46 }
  0x56   :  { %v123_v51 = vmul.f32 0.25, %v121_v48 }
  0x57   :  { %v124_v52 = vmul.f32 0.25, %v122_v50 }
  0x58   :  { %v125_v53 = vmul.f32 %v123_v51, %v113_v47 }
  0x59   :  { %v126_v54 = vmul.f32 %v124_v52, %v114_v49 }
  0x5b   :  { %v133_v55 = vadd.f32 %v126_v54, %v125_v53 }
  0x5d   :  { %149 = vst [vmem:[#allocation7 + $0x18] sm:$0xff] %v133_v55 }
  0x5e   :  { %245 = shalt.err (!%p242_p6)
}
  0x5f   :  { %s246_s10 = scalar_lea.hbm %s329_s2, 512 }
  0x60   :  { %p247_p7 = scmp.ne.s32.totalorder %s329_s2, %s246_s10  ;;  %p250_p8 = scmp.lt.u32.totalorder %s246_s10, %s329_s2 }
  0x62   :  { %p252_p9 = pnand %p250_p8, %p247_p7 }
  0x64   :  { %255 = shalt.err (!%p252_p9)
}
  0x65   :  { %161 = dma.vmem_to_hbm [thread:$0]  %s156_s6, 512, %s329_s2, [#allocation4], %s263_s19, %s263_s19, %s264_s20  }
  0x66   :  { %260 = dma.done.wait [#allocation4], 512  }
  0x67   :  { %261 = vsyncadd [#allocation4], 4294966784 }
  0x68   :  { %165 = vsyncpa [#allocation3], 1 }
  0x69   :  { %166 = vsyncpa [#allocation6], 1 }
  0x6a   :  { %167 = vsyncpa [#allocation4], 1 }

</bundles_post_ra>
